<compile_context>
chip_gen: v6e
topology: v6e:2x2x1
jax: 0.10.0
libtpu: 0.0.40
codegen_flags: <defaults>
</compile_context>

<pallas_src>
import functools

import jax
import jax.numpy as jnp
from jax.experimental import pallas as pl
from jax.experimental.pallas import tpu as pltpu


def lstm_enhanced_embedding_kernel(T, B, E, H, data_ref, w_ref, b_ref, out_ref):
    """Packed-slab kernel.

    data_ref: (T*B + B, E) f32   rows [0,T*B)   = time-major flattened x
                                 rows [T*B,..)  = player_embedding
    w_ref:    (2E + 2H + 128, 128) bf16  rows: w_ih(E) | w_hh(H) | w1_h(H) | w1_e(E) | w2_pad(128)
    b_ref:    (3, 128) f32  rows: (b_ih + b_hh) | b_fc1 | b_fc2 (lane-padded)
    out_ref:  (B, 128) f32  lane-dense, fc2 output padded to 128 columns
    """
    TB = T * B

    # Tile-aligned static views into the packed slabs (offsets are multiples of
    # 8 sublanes for f32 / 16 for bf16 -> zero-cost ref slices).
    x2d = data_ref[0:TB, :].astype(jnp.bfloat16)          # (T*B, E)
    pe  = data_ref[TB:TB + B, :].astype(jnp.bfloat16)     # (B, E)
    w_ih = w_ref[0:E, :]                                   # (E, 4H)   bf16
    w_hh = w_ref[E:E + H, :]                               # (H, 4H)   bf16
    w1_h = w_ref[E + H:E + 2 * H, :]                       # (H, 128)  bf16
    w1_e = w_ref[E + 2 * H:2 * (E + H), :]                 # (E, 128)  bf16
    w2   = w_ref[2 * (E + H):, :]                          # (128,128) bf16
    biases = b_ref[...]                                    # (3, 128)  f32, loaded once

    # ---- input projection for ALL timesteps in one MXU matmul, bias folded once
    xproj = jnp.dot(x2d, w_ih, preferred_element_type=jnp.float32) + biases[0:1, :]  # (T*B, 4H)

    # ---- serial LSTM recurrence, fully unrolled (T small & static) ----
    # TODO(synk): could hold w_hh resident in MXU weight regs across the 8 steps
    # via pltpu.matmul_push_rhs / matmul_acc_lhs / matmul_pop; kept as jnp.dot
    # for portable, known-good lowering.
    h_bf = jnp.zeros((B, H), jnp.bfloat16)
    c = jnp.zeros((B, H), jnp.float32)
    for t in range(T):
        gates = (xproj[t * B:(t + 1) * B, :]
                 + jnp.dot(h_bf, w_hh, preferred_element_type=jnp.float32))   # (B, 4H) f32
        sig = jax.nn.sigmoid(gates)        # one full-vreg EUP pass
        th  = jnp.tanh(gates)              # one full-vreg EUP pass
        i_g, f_g, o_g = sig[:, 0:H], sig[:, H:2 * H], sig[:, 3 * H:4 * H]
        g_g = th[:, 2 * H:3 * H]
        c = f_g * c + i_g * g_g
        h_bf = (o_g * jnp.tanh(c)).astype(jnp.bfloat16)    # cast once; bf16 shadow of h

    # ---- fc1 on concat([h, player_embedding]) as a split matmul-sum (no lane concat)
    z1 = (jnp.dot(h_bf, w1_h, preferred_element_type=jnp.float32)
          + jnp.dot(pe, w1_e, preferred_element_type=jnp.float32)
          + biases[1:2, :])
    a1 = jnp.maximum(z1, 0.0)                              # ReLU
    # TODO(synk): nn.Dropout (and nn.LSTM's dropout arg, a no-op for 1 layer) is
    # training-only; eval-mode forward => identity.

    out_ref[...] = (jnp.dot(a1.astype(jnp.bfloat16), w2, preferred_element_type=jnp.float32)
                    + biases[2:3, :])                      # (B, 128), single unmasked store


def pack_params(w_ih, w_hh, b_ih, b_hh, w_fc1, b_fc1, w_fc2, b_fc2):
    """Pack & pre-cast static parameters ONCE, outside the jitted hot path.

    Caller contract (document of the PyTorch -> packed layout):
      w_ih: (E, 4H)  = weight_ih_l0.T, gate order i,f,g,o
      w_hh: (H, 4H)  = weight_hh_l0.T
      w_fc1: (H+E, 128) = fc1.weight.T,  w_fc2: (128, O) = fc2.weight.T
    """
    E, G = w_ih.shape
    H = w_hh.shape[0]
    O = w_fc2.shape[1]
    assert G == 4 * H and w_hh.shape == (H, G), "w_ih/(E,4H), w_hh/(H,4H) expected (transposed)"
    assert w_fc1.shape == (H + E, 128) and b_fc1.shape == (128,)
    assert w_fc2.shape[0] == 128 and b_fc2.shape == (O,)
    assert G == 128, "packed slab layout assumes 4*hidden_dim == fc1 width == 128"

    w2_pad = jnp.zeros((128, 128), jnp.float32).at[:, :O].set(w_fc2)       # lane-dense fc2
    weights = jnp.concatenate(
        [w_ih, w_hh, w_fc1[:H], w_fc1[H:], w2_pad], axis=0).astype(jnp.bfloat16)  # (224,128)
    b2_pad = jnp.zeros((128,), jnp.float32).at[:O].set(b_fc2)
    biases = jnp.stack([b_ih + b_hh, b_fc1, b2_pad], axis=0).astype(jnp.float32)  # (3,128)
    return weights, biases, O


@functools.partial(jax.jit, static_argnames=("output_dim",))
def lstm_enhanced_embedding(x, player_embedding, weights, biases, *, output_dim):
    """Eval-mode forward. x: (B, T, E) batch-first; player_embedding: (B, E)."""
    B, T, E = x.shape
    H = (weights.shape[0] - 2 * E - 128) // 2

    # Flatten/pack activations into one DMA slab OUTSIDE the kernel (no in-kernel reshape).
    x_flat = jnp.transpose(x, (1, 0, 2)).reshape(T * B, E).astype(jnp.float32)
    data = jnp.concatenate([x_flat, player_embedding.astype(jnp.float32)], axis=0)

    cost = pl.CostEstimate(
        flops=(2 * T * B * E * 4 * H            # batched input projection
               + T * 2 * B * H * 4 * H          # recurrent matmuls
               + 2 * B * (H + E) * 128          # fc1 (split)
               + 2 * B * 128 * 128),            # fc2 (padded)
        transcendentals=T * B * (2 * 4 * H + H),
        bytes_accessed=int(data.size * 4 + weights.size * 2 + biases.size * 4 + B * 128 * 4),
    )

    vmem = pl.BlockSpec(memory_space=pltpu.MemorySpace.VMEM)   # whole array, VMEM resident
    out_pad = pl.pallas_call(
        functools.partial(lstm_enhanced_embedding_kernel, T, B, E, H),
        out_shape=jax.ShapeDtypeStruct((B, 128), jnp.float32),
        in_specs=[vmem, vmem, vmem],
        out_specs=vmem,
        cost_estimate=cost,
    )(data, weights, biases)
    return out_pad[:, :output_dim]


# ----------------------------- references ---------------------------------
def reference_forward_f32(x, pe, w_ih, w_hh, b_ih, b_hh, w_fc1, b_fc1, w_fc2, b_fc2):
    """Full-f32 reference (matches PyTorch eval-mode math)."""
    B, T, E = x.shape
    H = w_hh.shape[0]
    b = (b_ih + b_hh)[None, :]
    h = jnp.zeros((B, H), jnp.float32)
    c = jnp.zeros((B, H), jnp.float32)
    for t in range(T):
        gates = x[:, t, :] @ w_ih + h @ w_hh + b
        i_g = jax.nn.sigmoid(gates[:, 0 * H:1 * H])
        f_g = jax.nn.sigmoid(gates[:, 1 * H:2 * H])
        g_g = jnp.tanh(gates[:, 2 * H:3 * H])
        o_g = jax.nn.sigmoid(gates[:, 3 * H:4 * H])
        c = f_g * c + i_g * g_g
        h = o_g * jnp.tanh(c)
    z1 = jnp.concatenate([h, pe], axis=1) @ w_fc1 + b_fc1[None, :]
    a1 = jnp.maximum(z1, 0.0)
    return a1 @ w_fc2 + b_fc2[None, :]


def reference_forward_bf16(x, pe, w_ih, w_hh, b_ih, b_hh, w_fc1, b_fc1, w_fc2, b_fc2):
    """Matched-precision reference: bf16 MXU operands, f32 accumulate/elementwise."""
    B, T, E = x.shape
    H = w_hh.shape[0]
    bf = lambda a: a.astype(jnp.bfloat16)
    b = (b_ih + b_hh)[None, :]
    h = jnp.zeros((B, H), jnp.float32)
    c = jnp.zeros((B, H), jnp.float32)
    for t in range(T):
        gates = (jnp.dot(bf(x[:, t, :]), bf(w_ih), preferred_element_type=jnp.float32)
                 + jnp.dot(bf(h), bf(w_hh), preferred_element_type=jnp.float32) + b)
        i_g = jax.nn.sigmoid(gates[:, 0 * H:1 * H])
        f_g = jax.nn.sigmoid(gates[:, 1 * H:2 * H])
        g_g = jnp.tanh(gates[:, 2 * H:3 * H])
        o_g = jax.nn.sigmoid(gates[:, 3 * H:4 * H])
        c = f_g * c + i_g * g_g
        h = o_g * jnp.tanh(c)
    z1 = (jnp.dot(bf(h), bf(w_fc1[:H]), preferred_element_type=jnp.float32)
          + jnp.dot(bf(pe), bf(w_fc1[H:]), preferred_element_type=jnp.float32)
          + b_fc1[None, :])
    a1 = jnp.maximum(z1, 0.0)
    return jnp.dot(bf(a1), bf(w_fc2), preferred_element_type=jnp.float32) + b_fc2[None, :]


if __name__ == "__main__":
    # shapes consistent with the module: embedding_dim=16, hidden_dim=32, output_dim=8
    B, T, E, H, O = 8, 8, 16, 32, 8
    key = jax.random.PRNGKey(0)
    ks = jax.random.split(key, 10)
    s = 0.1

    x = jax.random.normal(ks[0], (B, T, E), jnp.float32)
    player_embedding = jax.random.normal(ks[1], (B, E), jnp.float32)

    w_ih = s * jax.random.normal(ks[2], (E, 4 * H), jnp.float32)
    w_hh = s * jax.random.normal(ks[3], (H, 4 * H), jnp.float32)
    b_ih = s * jax.random.normal(ks[4], (4 * H,), jnp.float32)
    b_hh = s * jax.random.normal(ks[5], (4 * H,), jnp.float32)
    w_fc1 = s * jax.random.normal(ks[6], (H + E, 128), jnp.float32)
    b_fc1 = s * jax.random.normal(ks[7], (128,), jnp.float32)
    w_fc2 = s * jax.random.normal(ks[8], (128, O), jnp.float32)
    b_fc2 = s * jax.random.normal(ks[9], (O,), jnp.float32)

    # one-time parameter packing / bf16 pre-cast (outside the jit hot path)
    weights, biases, out_dim = pack_params(w_ih, w_hh, b_ih, b_hh,
                                           w_fc1, b_fc1, w_fc2, b_fc2)

    out = lstm_enhanced_embedding(x, player_embedding, weights, biases,
                                  output_dim=out_dim)
    out = jax.block_until_ready(out)

    ref_bf = reference_forward_bf16(x, player_embedding, w_ih, w_hh, b_ih, b_hh,
                                    w_fc1, b_fc1, w_fc2, b_fc2)
    ref_f32 = reference_forward_f32(x, player_embedding, w_ih, w_hh, b_ih, b_hh,
                                    w_fc1, b_fc1, w_fc2, b_fc2)

    assert out.shape == (B, O)
    assert bool(jnp.all(jnp.isfinite(out)))
    err_bf = float(jnp.max(jnp.abs(out - ref_bf)))
    err_f32 = float(jnp.max(jnp.abs(out - ref_f32)))
    assert err_bf < 5e-3, f"max abs error vs matched-precision reference: {err_bf}"
    assert err_f32 < 2e-2, f"max abs error vs full-f32 reference: {err_f32}"
    print("KERNEL_OK")
</pallas_src>

<mosaic_0001>
module attributes {stable_mosaic.version = 11 : i64} {
  func.func @lstm_enhanced_embedding_kernel(%arg0: memref<72x16xf32, #tpu.memory_space<vmem>>, %arg1: memref<224x128xbf16, #tpu.memory_space<vmem>>, %arg2: memref<3x128xf32, #tpu.memory_space<vmem>>, %arg3: memref<8x128xf32, #tpu.memory_space<vmem>>) attributes {dimension_semantics = [], scalar_prefetch = 0 : i64, scratch_operands = 0 : i64, tpu.core_type = #tpu.core_type<tc>} {
    %c0 = arith.constant 0 : index
    %c0_0 = arith.constant 0 : index
    %0 = vector.load %arg0[%c0, %c0_0] : memref<72x16xf32, #tpu.memory_space<vmem>>, vector<64x16xf32>
    %1 = arith.truncf %0 : vector<64x16xf32> to vector<64x16xbf16>
    %c64 = arith.constant 64 : index
    %c0_1 = arith.constant 0 : index
    %2 = vector.load %arg0[%c64, %c0_1] : memref<72x16xf32, #tpu.memory_space<vmem>>, vector<8x16xf32>
    %3 = arith.truncf %2 : vector<8x16xf32> to vector<8x16xbf16>
    %c0_2 = arith.constant 0 : index
    %c0_3 = arith.constant 0 : index
    %4 = vector.load %arg1[%c0_2, %c0_3] : memref<224x128xbf16, #tpu.memory_space<vmem>>, vector<16x128xbf16>
    %c16 = arith.constant 16 : index
    %c0_4 = arith.constant 0 : index
    %5 = vector.load %arg1[%c16, %c0_4] : memref<224x128xbf16, #tpu.memory_space<vmem>>, vector<32x128xbf16>
    %c48 = arith.constant 48 : index
    %c0_5 = arith.constant 0 : index
    %6 = vector.load %arg1[%c48, %c0_5] : memref<224x128xbf16, #tpu.memory_space<vmem>>, vector<32x128xbf16>
    %c80 = arith.constant 80 : index
    %c0_6 = arith.constant 0 : index
    %7 = vector.load %arg1[%c80, %c0_6] : memref<224x128xbf16, #tpu.memory_space<vmem>>, vector<16x128xbf16>
    %c96 = arith.constant 96 : index
    %c0_7 = arith.constant 0 : index
    %8 = vector.load %arg1[%c96, %c0_7] : memref<224x128xbf16, #tpu.memory_space<vmem>>, vector<128x128xbf16>
    %c0_8 = arith.constant 0 : index
    %c0_9 = arith.constant 0 : index
    %9 = vector.load %arg2[%c0_8, %c0_9] : memref<3x128xf32, #tpu.memory_space<vmem>>, vector<3x128xf32>
    %cst = arith.constant dense<0.000000e+00> : vector<64x128xf32>
    %10 = tpu.matmul %1, %4, %cst {dimension_numbers = #tpu.dot_dimension_numbers<[1], [0], [0], [1], [0, 0, 1, 1], [], []>} : vector<64x16xbf16>, vector<16x128xbf16>, vector<64x128xf32> -> vector<64x128xf32>
    %11 = vector.extract_strided_slice %9 {offsets = [0, 0], sizes = [1, 128], strides = [1, 1]} : vector<3x128xf32> to vector<1x128xf32>
    %12 = vector.broadcast %11 : vector<1x128xf32> to vector<64x128xf32>
    %13 = arith.addf %10, %12 : vector<64x128xf32>
    %cst_10 = arith.constant 0.000000e+00 : bf16
    %14 = vector.broadcast %cst_10 : bf16 to vector<8x32xbf16>
    %cst_11 = arith.constant 0.000000e+00 : f32
    %15 = vector.broadcast %cst_11 : f32 to vector<8x32xf32>
    %16 = vector.extract_strided_slice %13 {offsets = [0, 0], sizes = [8, 128], strides = [1, 1]} : vector<64x128xf32> to vector<8x128xf32>
    %cst_12 = arith.constant dense<0.000000e+00> : vector<8x128xf32>
    %17 = tpu.matmul %14, %5, %cst_12 {dimension_numbers = #tpu.dot_dimension_numbers<[1], [0], [0], [1], [0, 0, 1, 1], [], []>} : vector<8x32xbf16>, vector<32x128xbf16>, vector<8x128xf32> -> vector<8x128xf32>
    %18 = arith.addf %16, %17 : vector<8x128xf32>
    %19 = arith.negf %18 : vector<8x128xf32>
    %20 = math.exp %19 : vector<8x128xf32>
    %cst_13 = arith.constant 1.000000e+00 : f32
    %21 = vector.broadcast %cst_13 : f32 to vector<8x128xf32>
    %22 = arith.addf %21, %20 : vector<8x128xf32>
    %23 = arith.divf %21, %22 : vector<8x128xf32>
    %24 = math.tanh %18 : vector<8x128xf32>
    %25 = vector.extract_strided_slice %23 {offsets = [0, 0], sizes = [8, 32], strides = [1, 1]} : vector<8x128xf32> to vector<8x32xf32>
    %26 = vector.extract_strided_slice %23 {offsets = [0, 32], sizes = [8, 32], strides = [1, 1]} : vector<8x128xf32> to vector<8x32xf32>
    %27 = vector.extract_strided_slice %23 {offsets = [0, 96], sizes = [8, 32], strides = [1, 1]} : vector<8x128xf32> to vector<8x32xf32>
    %28 = vector.extract_strided_slice %24 {offsets = [0, 64], sizes = [8, 32], strides = [1, 1]} : vector<8x128xf32> to vector<8x32xf32>
    %29 = arith.mulf %26, %15 : vector<8x32xf32>
    %30 = arith.mulf %25, %28 : vector<8x32xf32>
    %31 = arith.addf %29, %30 : vector<8x32xf32>
    %32 = math.tanh %31 : vector<8x32xf32>
    %33 = arith.mulf %27, %32 : vector<8x32xf32>
    %34 = arith.truncf %33 : vector<8x32xf32> to vector<8x32xbf16>
    %35 = vector.extract_strided_slice %13 {offsets = [8, 0], sizes = [8, 128], strides = [1, 1]} : vector<64x128xf32> to vector<8x128xf32>
    %cst_14 = arith.constant dense<0.000000e+00> : vector<8x128xf32>
    %36 = tpu.matmul %34, %5, %cst_14 {dimension_numbers = #tpu.dot_dimension_numbers<[1], [0], [0], [1], [0, 0, 1, 1], [], []>} : vector<8x32xbf16>, vector<32x128xbf16>, vector<8x128xf32> -> vector<8x128xf32>
    %37 = arith.addf %35, %36 : vector<8x128xf32>
    %38 = arith.negf %37 : vector<8x128xf32>
    %39 = math.exp %38 : vector<8x128xf32>
    %cst_15 = arith.constant 1.000000e+00 : f32
    %40 = vector.broadcast %cst_15 : f32 to vector<8x128xf32>
    %41 = arith.addf %40, %39 : vector<8x128xf32>
    %42 = arith.divf %40, %41 : vector<8x128xf32>
    %43 = math.tanh %37 : vector<8x128xf32>
    %44 = vector.extract_strided_slice %42 {offsets = [0, 0], sizes = [8, 32], strides = [1, 1]} : vector<8x128xf32> to vector<8x32xf32>
    %45 = vector.extract_strided_slice %42 {offsets = [0, 32], sizes = [8, 32], strides = [1, 1]} : vector<8x128xf32> to vector<8x32xf32>
    %46 = vector.extract_strided_slice %42 {offsets = [0, 96], sizes = [8, 32], strides = [1, 1]} : vector<8x128xf32> to vector<8x32xf32>
    %47 = vector.extract_strided_slice %43 {offsets = [0, 64], sizes = [8, 32], strides = [1, 1]} : vector<8x128xf32> to vector<8x32xf32>
    %48 = arith.mulf %45, %31 : vector<8x32xf32>
    %49 = arith.mulf %44, %47 : vector<8x32xf32>
    %50 = arith.addf %48, %49 : vector<8x32xf32>
    %51 = math.tanh %50 : vector<8x32xf32>
    %52 = arith.mulf %46, %51 : vector<8x32xf32>
    %53 = arith.truncf %52 : vector<8x32xf32> to vector<8x32xbf16>
    %54 = vector.extract_strided_slice %13 {offsets = [16, 0], sizes = [8, 128], strides = [1, 1]} : vector<64x128xf32> to vector<8x128xf32>
    %cst_16 = arith.constant dense<0.000000e+00> : vector<8x128xf32>
    %55 = tpu.matmul %53, %5, %cst_16 {dimension_numbers = #tpu.dot_dimension_numbers<[1], [0], [0], [1], [0, 0, 1, 1], [], []>} : vector<8x32xbf16>, vector<32x128xbf16>, vector<8x128xf32> -> vector<8x128xf32>
    %56 = arith.addf %54, %55 : vector<8x128xf32>
    %57 = arith.negf %56 : vector<8x128xf32>
    %58 = math.exp %57 : vector<8x128xf32>
    %cst_17 = arith.constant 1.000000e+00 : f32
    %59 = vector.broadcast %cst_17 : f32 to vector<8x128xf32>
    %60 = arith.addf %59, %58 : vector<8x128xf32>
    %61 = arith.divf %59, %60 : vector<8x128xf32>
    %62 = math.tanh %56 : vector<8x128xf32>
    %63 = vector.extract_strided_slice %61 {offsets = [0, 0], sizes = [8, 32], strides = [1, 1]} : vector<8x128xf32> to vector<8x32xf32>
    %64 = vector.extract_strided_slice %61 {offsets = [0, 32], sizes = [8, 32], strides = [1, 1]} : vector<8x128xf32> to vector<8x32xf32>
    %65 = vector.extract_strided_slice %61 {offsets = [0, 96], sizes = [8, 32], strides = [1, 1]} : vector<8x128xf32> to vector<8x32xf32>
    %66 = vector.extract_strided_slice %62 {offsets = [0, 64], sizes = [8, 32], strides = [1, 1]} : vector<8x128xf32> to vector<8x32xf32>
    %67 = arith.mulf %64, %50 : vector<8x32xf32>
    %68 = arith.mulf %63, %66 : vector<8x32xf32>
    %69 = arith.addf %67, %68 : vector<8x32xf32>
    %70 = math.tanh %69 : vector<8x32xf32>
    %71 = arith.mulf %65, %70 : vector<8x32xf32>
    %72 = arith.truncf %71 : vector<8x32xf32> to vector<8x32xbf16>
    %73 = vector.extract_strided_slice %13 {offsets = [24, 0], sizes = [8, 128], strides = [1, 1]} : vector<64x128xf32> to vector<8x128xf32>
    %cst_18 = arith.constant dense<0.000000e+00> : vector<8x128xf32>
    %74 = tpu.matmul %72, %5, %cst_18 {dimension_numbers = #tpu.dot_dimension_numbers<[1], [0], [0], [1], [0, 0, 1, 1], [], []>} : vector<8x32xbf16>, vector<32x128xbf16>, vector<8x128xf32> -> vector<8x128xf32>
    %75 = arith.addf %73, %74 : vector<8x128xf32>
    %76 = arith.negf %75 : vector<8x128xf32>
    %77 = math.exp %76 : vector<8x128xf32>
    %cst_19 = arith.constant 1.000000e+00 : f32
    %78 = vector.broadcast %cst_19 : f32 to vector<8x128xf32>
    %79 = arith.addf %78, %77 : vector<8x128xf32>
    %80 = arith.divf %78, %79 : vector<8x128xf32>
    %81 = math.tanh %75 : vector<8x128xf32>
    %82 = vector.extract_strided_slice %80 {offsets = [0, 0], sizes = [8, 32], strides = [1, 1]} : vector<8x128xf32> to vector<8x32xf32>
    %83 = vector.extract_strided_slice %80 {offsets = [0, 32], sizes = [8, 32], strides = [1, 1]} : vector<8x128xf32> to vector<8x32xf32>
    %84 = vector.extract_strided_slice %80 {offsets = [0, 96], sizes = [8, 32], strides = [1, 1]} : vector<8x128xf32> to vector<8x32xf32>
    %85 = vector.extract_strided_slice %81 {offsets = [0, 64], sizes = [8, 32], strides = [1, 1]} : vector<8x128xf32> to vector<8x32xf32>
    %86 = arith.mulf %83, %69 : vector<8x32xf32>
    %87 = arith.mulf %82, %85 : vector<8x32xf32>
    %88 = arith.addf %86, %87 : vector<8x32xf32>
    %89 = math.tanh %88 : vector<8x32xf32>
    %90 = arith.mulf %84, %89 : vector<8x32xf32>
    %91 = arith.truncf %90 : vector<8x32xf32> to vector<8x32xbf16>
    %92 = vector.extract_strided_slice %13 {offsets = [32, 0], sizes = [8, 128], strides = [1, 1]} : vector<64x128xf32> to vector<8x128xf32>
    %cst_20 = arith.constant dense<0.000000e+00> : vector<8x128xf32>
    %93 = tpu.matmul %91, %5, %cst_20 {dimension_numbers = #tpu.dot_dimension_numbers<[1], [0], [0], [1], [0, 0, 1, 1], [], []>} : vector<8x32xbf16>, vector<32x128xbf16>, vector<8x128xf32> -> vector<8x128xf32>
    %94 = arith.addf %92, %93 : vector<8x128xf32>
    %95 = arith.negf %94 : vector<8x128xf32>
    %96 = math.exp %95 : vector<8x128xf32>
    %cst_21 = arith.constant 1.000000e+00 : f32
    %97 = vector.broadcast %cst_21 : f32 to vector<8x128xf32>
    %98 = arith.addf %97, %96 : vector<8x128xf32>
    %99 = arith.divf %97, %98 : vector<8x128xf32>
    %100 = math.tanh %94 : vector<8x128xf32>
    %101 = vector.extract_strided_slice %99 {offsets = [0, 0], sizes = [8, 32], strides = [1, 1]} : vector<8x128xf32> to vector<8x32xf32>
    %102 = vector.extract_strided_slice %99 {offsets = [0, 32], sizes = [8, 32], strides = [1, 1]} : vector<8x128xf32> to vector<8x32xf32>
    %103 = vector.extract_strided_slice %99 {offsets = [0, 96], sizes = [8, 32], strides = [1, 1]} : vector<8x128xf32> to vector<8x32xf32>
    %104 = vector.extract_strided_slice %100 {offsets = [0, 64], sizes = [8, 32], strides = [1, 1]} : vector<8x128xf32> to vector<8x32xf32>
    %105 = arith.mulf %102, %88 : vector<8x32xf32>
    %106 = arith.mulf %101, %104 : vector<8x32xf32>
    %107 = arith.addf %105, %106 : vector<8x32xf32>
    %108 = math.tanh %107 : vector<8x32xf32>
    %109 = arith.mulf %103, %108 : vector<8x32xf32>
    %110 = arith.truncf %109 : vector<8x32xf32> to vector<8x32xbf16>
    %111 = vector.extract_strided_slice %13 {offsets = [40, 0], sizes = [8, 128], strides = [1, 1]} : vector<64x128xf32> to vector<8x128xf32>
    %cst_22 = arith.constant dense<0.000000e+00> : vector<8x128xf32>
    %112 = tpu.matmul %110, %5, %cst_22 {dimension_numbers = #tpu.dot_dimension_numbers<[1], [0], [0], [1], [0, 0, 1, 1], [], []>} : vector<8x32xbf16>, vector<32x128xbf16>, vector<8x128xf32> -> vector<8x128xf32>
    %113 = arith.addf %111, %112 : vector<8x128xf32>
    %114 = arith.negf %113 : vector<8x128xf32>
    %115 = math.exp %114 : vector<8x128xf32>
    %cst_23 = arith.constant 1.000000e+00 : f32
    %116 = vector.broadcast %cst_23 : f32 to vector<8x128xf32>
    %117 = arith.addf %116, %115 : vector<8x128xf32>
    %118 = arith.divf %116, %117 : vector<8x128xf32>
    %119 = math.tanh %113 : vector<8x128xf32>
    %120 = vector.extract_strided_slice %118 {offsets = [0, 0], sizes = [8, 32], strides = [1, 1]} : vector<8x128xf32> to vector<8x32xf32>
    %121 = vector.extract_strided_slice %118 {offsets = [0, 32], sizes = [8, 32], strides = [1, 1]} : vector<8x128xf32> to vector<8x32xf32>
    %122 = vector.extract_strided_slice %118 {offsets = [0, 96], sizes = [8, 32], strides = [1, 1]} : vector<8x128xf32> to vector<8x32xf32>
    %123 = vector.extract_strided_slice %119 {offsets = [0, 64], sizes = [8, 32], strides = [1, 1]} : vector<8x128xf32> to vector<8x32xf32>
    %124 = arith.mulf %121, %107 : vector<8x32xf32>
    %125 = arith.mulf %120, %123 : vector<8x32xf32>
    %126 = arith.addf %124, %125 : vector<8x32xf32>
    %127 = math.tanh %126 : vector<8x32xf32>
    %128 = arith.mulf %122, %127 : vector<8x32xf32>
    %129 = arith.truncf %128 : vector<8x32xf32> to vector<8x32xbf16>
    %130 = vector.extract_strided_slice %13 {offsets = [48, 0], sizes = [8, 128], strides = [1, 1]} : vector<64x128xf32> to vector<8x128xf32>
    %cst_24 = arith.constant dense<0.000000e+00> : vector<8x128xf32>
    %131 = tpu.matmul %129, %5, %cst_24 {dimension_numbers = #tpu.dot_dimension_numbers<[1], [0], [0], [1], [0, 0, 1, 1], [], []>} : vector<8x32xbf16>, vector<32x128xbf16>, vector<8x128xf32> -> vector<8x128xf32>
    %132 = arith.addf %130, %131 : vector<8x128xf32>
    %133 = arith.negf %132 : vector<8x128xf32>
    %134 = math.exp %133 : vector<8x128xf32>
    %cst_25 = arith.constant 1.000000e+00 : f32
    %135 = vector.broadcast %cst_25 : f32 to vector<8x128xf32>
    %136 = arith.addf %135, %134 : vector<8x128xf32>
    %137 = arith.divf %135, %136 : vector<8x128xf32>
    %138 = math.tanh %132 : vector<8x128xf32>
    %139 = vector.extract_strided_slice %137 {offsets = [0, 0], sizes = [8, 32], strides = [1, 1]} : vector<8x128xf32> to vector<8x32xf32>
    %140 = vector.extract_strided_slice %137 {offsets = [0, 32], sizes = [8, 32], strides = [1, 1]} : vector<8x128xf32> to vector<8x32xf32>
    %141 = vector.extract_strided_slice %137 {offsets = [0, 96], sizes = [8, 32], strides = [1, 1]} : vector<8x128xf32> to vector<8x32xf32>
    %142 = vector.extract_strided_slice %138 {offsets = [0, 64], sizes = [8, 32], strides = [1, 1]} : vector<8x128xf32> to vector<8x32xf32>
    %143 = arith.mulf %140, %126 : vector<8x32xf32>
    %144 = arith.mulf %139, %142 : vector<8x32xf32>
    %145 = arith.addf %143, %144 : vector<8x32xf32>
    %146 = math.tanh %145 : vector<8x32xf32>
    %147 = arith.mulf %141, %146 : vector<8x32xf32>
    %148 = arith.truncf %147 : vector<8x32xf32> to vector<8x32xbf16>
    %149 = vector.extract_strided_slice %13 {offsets = [56, 0], sizes = [8, 128], strides = [1, 1]} : vector<64x128xf32> to vector<8x128xf32>
    %cst_26 = arith.constant dense<0.000000e+00> : vector<8x128xf32>
    %150 = tpu.matmul %148, %5, %cst_26 {dimension_numbers = #tpu.dot_dimension_numbers<[1], [0], [0], [1], [0, 0, 1, 1], [], []>} : vector<8x32xbf16>, vector<32x128xbf16>, vector<8x128xf32> -> vector<8x128xf32>
    %151 = arith.addf %149, %150 : vector<8x128xf32>
    %152 = arith.negf %151 : vector<8x128xf32>
    %153 = math.exp %152 : vector<8x128xf32>
    %cst_27 = arith.constant 1.000000e+00 : f32
    %154 = vector.broadcast %cst_27 : f32 to vector<8x128xf32>
    %155 = arith.addf %154, %153 : vector<8x128xf32>
    %156 = arith.divf %154, %155 : vector<8x128xf32>
    %157 = math.tanh %151 : vector<8x128xf32>
    %158 = vector.extract_strided_slice %156 {offsets = [0, 0], sizes = [8, 32], strides = [1, 1]} : vector<8x128xf32> to vector<8x32xf32>
    %159 = vector.extract_strided_slice %156 {offsets = [0, 32], sizes = [8, 32], strides = [1, 1]} : vector<8x128xf32> to vector<8x32xf32>
    %160 = vector.extract_strided_slice %156 {offsets = [0, 96], sizes = [8, 32], strides = [1, 1]} : vector<8x128xf32> to vector<8x32xf32>
    %161 = vector.extract_strided_slice %157 {offsets = [0, 64], sizes = [8, 32], strides = [1, 1]} : vector<8x128xf32> to vector<8x32xf32>
    %162 = arith.mulf %159, %145 : vector<8x32xf32>
    %163 = arith.mulf %158, %161 : vector<8x32xf32>
    %164 = arith.addf %162, %163 : vector<8x32xf32>
    %165 = math.tanh %164 : vector<8x32xf32>
    %166 = arith.mulf %160, %165 : vector<8x32xf32>
    %167 = arith.truncf %166 : vector<8x32xf32> to vector<8x32xbf16>
    %cst_28 = arith.constant dense<0.000000e+00> : vector<8x128xf32>
    %168 = tpu.matmul %167, %6, %cst_28 {dimension_numbers = #tpu.dot_dimension_numbers<[1], [0], [0], [1], [0, 0, 1, 1], [], []>} : vector<8x32xbf16>, vector<32x128xbf16>, vector<8x128xf32> -> vector<8x128xf32>
    %cst_29 = arith.constant dense<0.000000e+00> : vector<8x128xf32>
    %169 = tpu.matmul %3, %7, %cst_29 {dimension_numbers = #tpu.dot_dimension_numbers<[1], [0], [0], [1], [0, 0, 1, 1], [], []>} : vector<8x16xbf16>, vector<16x128xbf16>, vector<8x128xf32> -> vector<8x128xf32>
    %170 = arith.addf %168, %169 : vector<8x128xf32>
    %171 = vector.extract_strided_slice %9 {offsets = [1, 0], sizes = [1, 128], strides = [1, 1]} : vector<3x128xf32> to vector<1x128xf32>
    %172 = vector.broadcast %171 : vector<1x128xf32> to vector<8x128xf32>
    %173 = arith.addf %170, %172 : vector<8x128xf32>
    %cst_30 = arith.constant 0.000000e+00 : f32
    %174 = vector.broadcast %cst_30 : f32 to vector<8x128xf32>
    %175 = arith.maximumf %173, %174 : vector<8x128xf32>
    %176 = arith.truncf %175 : vector<8x128xf32> to vector<8x128xbf16>
    %cst_31 = arith.constant dense<0.000000e+00> : vector<8x128xf32>
    %177 = tpu.matmul %176, %8, %cst_31 {dimension_numbers = #tpu.dot_dimension_numbers<[1], [0], [0], [1], [0, 0, 1, 1], [], []>} : vector<8x128xbf16>, vector<128x128xbf16>, vector<8x128xf32> -> vector<8x128xf32>
    %178 = vector.extract_strided_slice %9 {offsets = [2, 0], sizes = [1, 128], strides = [1, 1]} : vector<3x128xf32> to vector<1x128xf32>
    %179 = vector.broadcast %178 : vector<1x128xf32> to vector<8x128xf32>
    %180 = arith.addf %177, %179 : vector<8x128xf32>
    %c0_32 = arith.constant 0 : index
    %c0_33 = arith.constant 0 : index
    %181 = vector.load %arg3[%c0_32, %c0_33] : memref<8x128xf32, #tpu.memory_space<vmem>>, vector<8x128xf32>
    tpu.vector_store %arg3[%c0_32, %c0_33], %180 {strides = array<i32>} : memref<8x128xf32, #tpu.memory_space<vmem>>, vector<8x128xf32>,
    return
  }
}

</mosaic_0001>

<bundles_post_ra>
// kernel: lstm_enhanced_embedding.1
= control target key start
LH: loop header
LB: loop body
LE: loop exit
PB: predicated region body
PF: predicated region fallthrough
CT: control target
= control target key end

     0   :  { %vm69_vm0 = vcmask 130048   ;;  %v1246_v6 = vmov 0.0   ;;  %vm1247_vm1 = vmmov 0   ;;  %s1489_s0 = inlined_call_operand.vmem [shape: f32[72,16], index: 0, kind: input, shape index: {}]   ;;  %s1490_s1 = inlined_call_operand.vmem [shape: bf16[224,128], index: 1, kind: input, shape index: {}]   ;;  %s1491_s2 = inlined_call_operand.vmem [shape: f32[3,128], index: 2, kind: input, shape index: {}]   ;;  %s1492_s3 = inlined_call_operand.hbm [shape: f32[8,128], index: 3, kind: output, shape index: {}]  }
   0x1   :  { %v1146_v0 = vld [vmem:[%s1490_s1] sm:$0xff]   ;;  %v17_v2 = vld [vmem:[%s1489_s0 + $0x8] sm:$0xff]  ;;  %v18_v3 = vld [vmem:[%s1489_s0 + $0x10] sm:$0xff]  ;;  %1058 = vmatprep.subr.bf16.mxu0 %v1246_v6  ;;  %1062 = vmatprep.mubr.msk.bf16.mxu0 %vm1247_vm1, %v1246_v6 }
   0x2   :  { %v16_v1 = vld [vmem:[%s1489_s0] sm:$0xff]  ;;  %1032 = vmatprep.subr.bf16.mxu1 %v1146_v0  ;;  %v19_v5 = vld [vmem:[%s1489_s0 + $0x18] sm:$0xff]  ;;  %v1291_v8 = vld [vmem:[%s1490_s1 + $0x10] sm:$0xff]  }
   0x3   :  { %v24_v4 = vpack.c.bf16 %v17_v2, %v16_v1  ;;  %1033 = vmatpush3.bf16.msra.mxu1 %v1146_v0  ;;  %v25_v7 = vpack.c.bf16 %v19_v5, %v18_v3  ;;  %v20_v9 = vld [vmem:[%s1489_s0 + $0x20] sm:$0xff]  ;;  %v21_v10 = vld [vmem:[%s1489_s0 + $0x28] sm:$0xff]  ;;  %v22_v12 = vld [vmem:[%s1489_s0 + $0x30] sm:$0xff]  ;;  %1059 = vmatpush3.bf16.msra.mxu0 %v1291_v8 }
   0x4   :  { %1042 = vmatprep.subr.bf16.mxu1 %v1246_v6  ;;  %v26_v11 = vpack.c.bf16 %v21_v10, %v20_v9  ;;  %v23_v13 = vld [vmem:[%s1489_s0 + $0x38] sm:$0xff]  ;;  %v1312_v14 = vld [vmem:[%s1490_s1 + $0x8] sm:$0xff]   ;;  %1060 = vmatprep.subr.bf16.mxu0 %v1246_v6 }
   0x5   :  { %1034 = vmatprep.mubr.msk.bf16.mxu1 %vm69_vm0, %v24_v4  ;;  %v27_v15 = vpack.c.bf16 %v23_v13, %v22_v12 }
   0x6   :  { %1035 = vmatmul.mubr.msk.bf16.vlgmr.msra.gmra.mxu1 %vm69_vm0, %v25_v7 }
   0x7   :  { %1043 = vmatpush3.bf16.msra.mxu1 %v1291_v8  ;;  %1038 = vmatprep.mubr.msk.bf16.mxu1 %vm69_vm0, %v26_v11 }
   0x8   :  { %1044 = vmatprep.subr.bf16.mxu1 %v1246_v6  ;;  %1061 = vmatpush3.bf16.msra.mxu0 %v1312_v14 }
   0x9   :  { %1074 = vmatprep.subr.bf16.mxu0 %v1246_v6 }
   0xb   :  { %1045 = vmatpush3.bf16.msra.mxu1 %v1312_v14 }
   0xc   :  { %1050 = vmatprep.subr.bf16.mxu1 %v1246_v6 }
   0xd   :  { %8 = vsyncpa [#allocation3], 0  ;;  %v1248_v16 = vmov 0   ;;  %v59_v17 = vlaneseq  ;;  %v1339_v20 = vld [vmem:[%s1491_s2] sm:$0x7]  ;;  %s1249_s2 = smov 64  }
   0xe   :  { %1039 = vmatmul.mubr.msk.bf16.gmra.mxu1 %vm69_vm0, %v27_v15  ;;  %s1250_s9 = smov 32   ;;  %vm159_vm2 = vcmask 261120   ;;  %s1251_s6 = smov [#allocation2]  }
   0xf   :  { %1046 = vmatprep.mubr.msk.bf16.mxu1 %vm1247_vm1, %v1246_v6  ;;  %v1333_v18 = vshrl.u32 %v59_v17, 7 }
  0x11   :  { %v61_v19 = vsub.s32 0, %v1333_v18 }
  0x13   :  { %v62_v21 = vrot.slane %v1339_v20, %v61_v19 }
  0x16   :  { %1047 = vmatmul.mubr.bf16.vlgmr.msra.gmra.mxu1 %v1248_v16 }
  0x17   :  { %1051 = vmatpush3.bf16.msra.mxu1 %v1291_v8  ;;  %1054 = vmatprep.mubr.msk.bf16.mxu1 %vm1247_vm1, %v1246_v6 }
  0x18   :  { %1052 = vmatprep.subr.bf16.mxu1 %v1246_v6 }
  0x1b   :  { %1053 = vmatpush3.bf16.msra.mxu1 %v1312_v14 }
  0x1c   :  { %1066 = vmatprep.subr.bf16.mxu1 %v1246_v6 }
  0xc6   :  { %v1036_v22 = vpop.f32.mrf.mxu1 }
  0xc7   :  { %v1342_v23 = vadd.f32 %v1036_v22, %v62_v21 }
  0xc8   :  { %v116_v24 = vpop.f32.mrf.mxu1 }
  0xc9   :  { %v117_v36 = vadd.f32 %v116_v24, %v62_v21 }
  0xca   :  { %v1037_v25 = vpop.f32.mrf.mxu1 }
  0xcb   :  { %v1344_v26 = vadd.f32 %v1037_v25, %v62_v21 }
  0xcc   :  { %v119_v27 = vpop.f32.mrf.mxu1 }
  0xcd   :  { %v120_v28 = vadd.f32 %v119_v27, %v62_v21 }
  0xce   :  { %v1040_v29 = vpop.f32.mrf.mxu1 }
  0xcf   :  { %v1346_v30 = vadd.f32 %v1040_v29, %v62_v21 }
  0xd0   :  { %v132_v31 = vpop.f32.mrf.mxu1 }
  0xd1   :  { %v1348_v32 = vadd.f32 %v132_v31, %v62_v21 }
  0xd2   :  { %v1041_v33 = vpop.f32.mrf.mxu1 }
  0xd3   :  { %v1350_v34 = vadd.f32 %v1041_v33, %v62_v21 }
  0xd4   :  { %v135_v35 = vpop.f32.mrf.mxu1 }
  0xd5   :  { %v1352_v37 = vadd.f32 %v135_v35, %v62_v21 }
  0xd6   :  { %v197_v38 = vpop.f32.mrf.mxu1 }
  0xd7   :  { %v203_v39 = vadd.f32 %v197_v38, %v117_v36 }
  0xd8   :  { %v1048_v40 = vpop.f32.mrf.mxu1 }
  0xd9   :  { %1160 = vtanh.f32 %v203_v39  ;;  %v961_v44 = vmul.f32 -1.442695, %v203_v39 }
  0xda   :  { %v200_v41 = vpop.f32.mrf.mxu1 }
  0xdb   :  { %1162 = vpow2.f32 %v961_v44 }
  0xdc   :  { %v1049_v42 = vpop.f32.mrf.mxu1 }
  0xe6   :  { %v1161_v43 = vpop.eup %1160 }
  0xe7   :  { %213 = vrot.lane.b32.xlu0 %v1161_v43, %s1249_s2 }
  0xe8   :  { %v1163_v45 = vpop.eup %1162 }
  0xe9   :  { %v207_v46 = vadd.f32 1.0, %v1163_v45 }
  0xeb   :  { %1164 = vrcp.f32 %v207_v46 }
  0xf8   :  { %v1165_v47 = vpop.eup %1164 }
  0xf9   :  { %v211_v50 = vmul.f32 0.0, %v1165_v47 }
 0x159   :  { %v214_v48 = vpop.permute.xlu0 %213 }
 0x15a   :  { %v216_v49 = vmul.f32 %v1165_v47, %v214_v48 }
 0x15c   :  { %218 = vrot.lane.b32.xlu0 %v216_v49, %s1250_s9 }
 0x1ce   :  { %v219_v51 = vpop.permute.xlu0 %218 }
 0x1cf   :  { %v221_v52 = vadd.f32 %v219_v51, %v211_v50 }
 0x1d1   :  { %1166 = vtanh.f32 %v221_v52 }
 0x1de   :  { %v1167_v53 = vpop.eup %1166 }
 0x1df   :  { %224 = vrot.lane.b32.xlu1 %v1167_v53, %s1249_s2 }
 0x251   :  { %v225_v54 = vpop.permute.xlu1 %224 }
 0x252   :  { %v227_v55 = vmul.f32 %v1165_v47, %v225_v54 }
 0x254   :  { %v228_v56 = vpack.c.bf16 %v227_v55, %v227_v55 }
 0x256   :  { %230 = vrot.lane.b32.xlu1 %v228_v56, %s1250_s9 }
 0x2c8   :  { %v231_v57 = vpop.permute.xlu1 %230 }
 0x2c9   :  { %1055 = vmatmul.mubr.msk.bf16.vlgmr.msra.gmra.mxu1 %vm159_vm2, %v231_v57 }
 0x2ca   :  { %1067 = vmatpush3.bf16.msra.mxu1 %v1291_v8  ;;  %1070 = vmatprep.mubr.msk.bf16.mxu1 %vm1247_vm1, %v1246_v6 }
 0x2cb   :  { %1068 = vmatprep.subr.bf16.mxu1 %v1246_v6 }
 0x2ce   :  { %1069 = vmatpush3.bf16.msra.mxu1 %v1312_v14 }
 0x2cf   :  { %1082 = vmatprep.subr.bf16.mxu1 %v1246_v6 }
 0x389   :  { %v269_v58 = vpop.f32.mrf.mxu1 }
 0x38a   :  { %v275_v59 = vadd.f32 %v269_v58, %v120_v28 }
 0x38b   :  { %v1056_v60 = vpop.f32.mrf.mxu1 }
 0x38c   :  { %1168 = vtanh.f32 %v275_v59  ;;  %v963_v0 = vmul.f32 -1.442695, %v275_v59 }
 0x38d   :  { %v272_v61 = vpop.f32.mrf.mxu1 }
 0x38e   :  { %1170 = vpow2.f32 %v963_v0 }
 0x38f   :  { %v1057_v62 = vpop.f32.mrf.mxu1 }
 0x399   :  { %v1169_v63 = vpop.eup %1168 }
 0x39a   :  { %285 = vrot.lane.b32.xlu0 %v1169_v63, %s1249_s2 }
 0x39b   :  { %v1171_v1 = vpop.eup %1170 }
 0x39c   :  { %v279_v2 = vadd.f32 1.0, %v1171_v1 }
 0x39e   :  { %1172 = vrcp.f32 %v279_v2 }
 0x3ab   :  { %v1173_v3 = vpop.eup %1172 }
 0x3ac   :  { %v283_v7 = vmul.f32 %v1173_v3, %v221_v52 }
 0x40c   :  { %v286_v4 = vpop.permute.xlu0 %285 }
 0x40d   :  { %v288_v5 = vmul.f32 %v1173_v3, %v286_v4 }
 0x40f   :  { %290 = vrot.lane.b32.xlu1 %v288_v5, %s1250_s9 }
 0x481   :  { %v291_v9 = vpop.permute.xlu1 %290 }
 0x482   :  { %v293_v10 = vadd.f32 %v291_v9, %v283_v7 }
 0x484   :  { %1174 = vtanh.f32 %v293_v10 }
 0x491   :  { %v1175_v11 = vpop.eup %1174 }
 0x492   :  { %296 = vrot.lane.b32.xlu0 %v1175_v11, %s1249_s2 }
 0x504   :  { %v297_v12 = vpop.permute.xlu0 %296 }
 0x505   :  { %v299_v13 = vmul.f32 %v1173_v3, %v297_v12 }
 0x507   :  { %v300_v15 = vpack.c.bf16 %v299_v13, %v299_v13 }
 0x509   :  { %302 = vrot.lane.b32.xlu1 %v300_v15, %s1250_s9 }
 0x57b   :  { %v303_v16 = vpop.permute.xlu1 %302 }
 0x57c   :  { %1063 = vmatmul.mubr.msk.bf16.vlgmr.msra.gmra.mxu0 %vm159_vm2, %v303_v16 }
 0x57d   :  { %1075 = vmatpush3.bf16.msra.mxu0 %v1291_v8  ;;  %1078 = vmatprep.mubr.msk.bf16.mxu0 %vm1247_vm1, %v1246_v6 }
 0x57e   :  { %1076 = vmatprep.subr.bf16.mxu0 %v1246_v6 }
 0x581   :  { %1077 = vmatpush3.bf16.msra.mxu0 %v1312_v14 }
 0x582   :  { %1090 = vmatprep.subr.bf16.mxu0 %v1246_v6 }
 0x63c   :  { %v341_v17 = vpop.f32.mrf.mxu0 }
 0x63d   :  { %v347_v19 = vadd.f32 %v341_v17, %v1342_v23 }
 0x63e   :  { %v1064_v21 = vpop.f32.mrf.mxu0 }
 0x63f   :  { %1176 = vtanh.f32 %v347_v19  ;;  %v965_v27 = vmul.f32 -1.442695, %v347_v19 }
 0x640   :  { %v344_v22 = vpop.f32.mrf.mxu0 }
 0x641   :  { %1178 = vpow2.f32 %v965_v27 }
 0x642   :  { %v1065_v24 = vpop.f32.mrf.mxu0 }
 0x64c   :  { %v1177_v25 = vpop.eup %1176 }
 0x64d   :  { %357 = vrot.lane.b32.xlu0 %v1177_v25, %s1249_s2 }
 0x64e   :  { %v1179_v28 = vpop.eup %1178 }
 0x64f   :  { %v351_v29 = vadd.f32 1.0, %v1179_v28 }
 0x651   :  { %1180 = vrcp.f32 %v351_v29 }
 0x65e   :  { %v1181_v31 = vpop.eup %1180 }
 0x65f   :  { %v355_v36 = vmul.f32 %v1181_v31, %v293_v10 }
 0x6bf   :  { %v358_v33 = vpop.permute.xlu0 %357 }
 0x6c0   :  { %v360_v35 = vmul.f32 %v1181_v31, %v358_v33 }
 0x6c2   :  { %362 = vrot.lane.b32.xlu1 %v360_v35, %s1250_s9 }
 0x734   :  { %v363_v38 = vpop.permute.xlu1 %362 }
 0x735   :  { %v365_v23 = vadd.f32 %v363_v38, %v355_v36 }
 0x737   :  { %1182 = vtanh.f32 %v365_v23 }
 0x744   :  { %v1183_v39 = vpop.eup %1182 }
 0x745   :  { %368 = vrot.lane.b32.xlu0 %v1183_v39, %s1249_s2 }
 0x7b7   :  { %v369_v40 = vpop.permute.xlu0 %368 }
 0x7b8   :  { %v371_v41 = vmul.f32 %v1181_v31, %v369_v40 }
 0x7ba   :  { %v372_v42 = vpack.c.bf16 %v371_v41, %v371_v41 }
 0x7bc   :  { %374 = vrot.lane.b32.xlu1 %v372_v42, %s1250_s9 }
 0x82e   :  { %v375_v43 = vpop.permute.xlu1 %374 }
 0x82f   :  { %1071 = vmatmul.mubr.msk.bf16.vlgmr.msra.gmra.mxu1 %vm159_vm2, %v375_v43 }
 0x830   :  { %1083 = vmatpush3.bf16.msra.mxu1 %v1291_v8  ;;  %1086 = vmatprep.mubr.msk.bf16.mxu1 %vm1247_vm1, %v1246_v6 }
 0x831   :  { %1084 = vmatprep.subr.bf16.mxu1 %v1246_v6 }
 0x834   :  { %1085 = vmatpush3.bf16.msra.mxu1 %v1312_v14 }
 0x835   :  { %1098 = vmatprep.subr.bf16.mxu1 %v1246_v6 }
 0x8ef   :  { %v413_v44 = vpop.f32.mrf.mxu1 }
 0x8f0   :  { %v419_v45 = vadd.f32 %v413_v44, %v1344_v26 }
 0x8f1   :  { %v1072_v46 = vpop.f32.mrf.mxu1 }
 0x8f2   :  { %1184 = vtanh.f32 %v419_v45  ;;  %v967_v50 = vmul.f32 -1.442695, %v419_v45 }
 0x8f3   :  { %v416_v47 = vpop.f32.mrf.mxu1 }
 0x8f4   :  { %1186 = vpow2.f32 %v967_v50 }
 0x8f5   :  { %v1073_v48 = vpop.f32.mrf.mxu1 }
 0x8ff   :  { %v1185_v49 = vpop.eup %1184 }
 0x900   :  { %429 = vrot.lane.b32.xlu0 %v1185_v49, %s1249_s2 }
 0x901   :  { %v1187_v51 = vpop.eup %1186 }
 0x902   :  { %v423_v52 = vadd.f32 1.0, %v1187_v51 }
 0x904   :  { %1188 = vrcp.f32 %v423_v52 }
 0x911   :  { %v1189_v53 = vpop.eup %1188 }
 0x912   :  { %v427_v56 = vmul.f32 %v1189_v53, %v365_v23 }
 0x972   :  { %v430_v54 = vpop.permute.xlu0 %429 }
 0x973   :  { %v432_v55 = vmul.f32 %v1189_v53, %v430_v54 }
 0x975   :  { %434 = vrot.lane.b32.xlu1 %v432_v55, %s1250_s9 }
 0x9e7   :  { %v435_v57 = vpop.permute.xlu1 %434 }
 0x9e8   :  { %v437_v26 = vadd.f32 %v435_v57, %v427_v56 }
 0x9ea   :  { %1190 = vtanh.f32 %v437_v26 }
 0x9f7   :  { %v1191_v58 = vpop.eup %1190 }
 0x9f8   :  { %440 = vrot.lane.b32.xlu0 %v1191_v58, %s1249_s2 }
 0xa6a   :  { %v441_v59 = vpop.permute.xlu0 %440 }
 0xa6b   :  { %v443_v60 = vmul.f32 %v1189_v53, %v441_v59 }
 0xa6d   :  { %v444_v61 = vpack.c.bf16 %v443_v60, %v443_v60 }
 0xa6f   :  { %446 = vrot.lane.b32.xlu1 %v444_v61, %s1250_s9 }
 0xae1   :  { %v447_v62 = vpop.permute.xlu1 %446 }
 0xae2   :  { %1079 = vmatmul.mubr.msk.bf16.vlgmr.msra.gmra.mxu0 %vm159_vm2, %v447_v62 }
 0xae3   :  { %1091 = vmatpush3.bf16.msra.mxu0 %v1291_v8  ;;  %1094 = vmatprep.mubr.msk.bf16.mxu0 %vm1247_vm1, %v1246_v6 }
 0xae4   :  { %1092 = vmatprep.subr.bf16.mxu0 %v1246_v6 }
 0xae7   :  { %1093 = vmatpush3.bf16.msra.mxu0 %v1312_v14 }
 0xae8   :  { %1106 = vmatprep.subr.bf16.mxu0 %v1246_v6 }
 0xba2   :  { %v485_v63 = vpop.f32.mrf.mxu0 }
 0xba3   :  { %v491_v0 = vadd.f32 %v485_v63, %v1348_v32 }
 0xba4   :  { %v1080_v1 = vpop.f32.mrf.mxu0 }
 0xba5   :  { %1192 = vtanh.f32 %v491_v0  ;;  %v969_v5 = vmul.f32 -1.442695, %v491_v0 }
 0xba6   :  { %v488_v2 = vpop.f32.mrf.mxu0 }
 0xba7   :  { %1194 = vpow2.f32 %v969_v5 }
 0xba8   :  { %v1081_v3 = vpop.f32.mrf.mxu0 }
 0xbb2   :  { %v1193_v4 = vpop.eup %1192 }
 0xbb3   :  { %501 = vrot.lane.b32.xlu0 %v1193_v4, %s1249_s2 }
 0xbb4   :  { %v1195_v7 = vpop.eup %1194 }
 0xbb5   :  { %v495_v9 = vadd.f32 1.0, %v1195_v7 }
 0xbb7   :  { %1196 = vrcp.f32 %v495_v9 }
 0xbc4   :  { %v1197_v10 = vpop.eup %1196 }
 0xbc5   :  { %v499_v13 = vmul.f32 %v1197_v10, %v437_v26 }
 0xc25   :  { %v502_v11 = vpop.permute.xlu0 %501 }
 0xc26   :  { %v504_v12 = vmul.f32 %v1197_v10, %v502_v11 }
 0xc28   :  { %506 = vrot.lane.b32.xlu1 %v504_v12, %s1250_s9 }
 0xc9a   :  { %v507_v15 = vpop.permute.xlu1 %506 }
 0xc9b   :  { %v509_v32 = vadd.f32 %v507_v15, %v499_v13 }
 0xc9d   :  { %1198 = vtanh.f32 %v509_v32 }
 0xcaa   :  { %v1199_v16 = vpop.eup %1198 }
 0xcab   :  { %512 = vrot.lane.b32.xlu0 %v1199_v16, %s1249_s2  ;;  %v1150_v16 = vld [vmem:[%s1490_s1 + $0x20] sm:$0xff]  }
 0xd1d   :  { %v513_v17 = vpop.permute.xlu0 %512 }
 0xd1e   :  { %v515_v19 = vmul.f32 %v1197_v10, %v513_v17  ;;  %v28_v17 = vld [vmem:[%s1489_s0 + $0x40] sm:$0xff] }
 0xd20   :  { %v516_v21 = vpack.c.bf16 %v515_v19, %v515_v19  ;;  %v29_v19 = vpack.c.bf16 %v28_v17, %v28_v17 }
 0xd22   :  { %518 = vrot.lane.b32.xlu1 %v516_v21, %s1250_s9  ;;  %v1151_v21 = vld [vmem:[%s1490_s1 + $0x18] sm:$0xff]  }
 0xd94   :  { %v519_v22 = vpop.permute.xlu1 %518 }
 0xd95   :  { %1087 = vmatmul.mubr.msk.bf16.vlgmr.msra.gmra.mxu1 %vm159_vm2, %v519_v22 }
 0xd96   :  { %1099 = vmatpush3.bf16.msra.mxu1 %v1291_v8  ;;  %1102 = vmatprep.mubr.msk.bf16.mxu1 %vm1247_vm1, %v1246_v6 }
 0xd97   :  { %1100 = vmatprep.subr.bf16.mxu1 %v1246_v6 }
 0xd9a   :  { %1101 = vmatpush3.bf16.msra.mxu1 %v1312_v14 }
 0xd9b   :  { %1112 = vmatprep.subr.bf16.mxu1 %v1246_v6 }
 0xe55   :  { %v557_v24 = vpop.f32.mrf.mxu1 }
 0xe56   :  { %v563_v25 = vadd.f32 %v557_v24, %v1352_v37  ;;  %v1152_v24 = vld [vmem:[%s1490_s1 + $0x68] sm:$0xff]  }
 0xe57   :  { %v1088_v27 = vpop.f32.mrf.mxu1 }
 0xe58   :  { %1200 = vtanh.f32 %v563_v25  ;;  %v971_v8 = vmul.f32 -1.442695, %v563_v25  ;;  %v1153_v25 = vld [vmem:[%s1490_s1 + $0x60] sm:$0xff]   ;;  %v1154_v27 = vld [vmem:[%s1490_s1 + $0x58] sm:$0xff]  }
 0xe59   :  { %v560_v28 = vpop.f32.mrf.mxu1 }
 0xe5a   :  { %1202 = vpow2.f32 %v971_v8 }
 0xe5b   :  { %v1089_v29 = vpop.f32.mrf.mxu1 }
 0xe65   :  { %v1201_v31 = vpop.eup %1200 }
 0xe66   :  { %573 = vrot.lane.b32.xlu0 %v1201_v31, %s1249_s2  ;;  %v1155_v31 = vld [vmem:[%s1490_s1 + $0x50] sm:$0xff]  }
 0xe67   :  { %v1203_v33 = vpop.eup %1202 }
 0xe68   :  { %v567_v35 = vadd.f32 1.0, %v1203_v33  ;;  %v1156_v33 = vld [vmem:[%s1490_s1 + $0x48] sm:$0xff]  }
 0xe6a   :  { %1204 = vrcp.f32 %v567_v35  ;;  %v1157_v35 = vld [vmem:[%s1490_s1 + $0x40] sm:$0xff]  }
 0xe77   :  { %v1205_v36 = vpop.eup %1204 }
 0xe78   :  { %v571_v23 = vmul.f32 %v1205_v36, %v509_v32  ;;  %v1149_v32 = vld [vmem:[%s1490_s1 + $0x28] sm:$0xff]  }
 0xed8   :  { %v574_v38 = vpop.permute.xlu0 %573 }
 0xed9   :  { %v576_v14 = vmul.f32 %v1205_v36, %v574_v38 }
 0xedb   :  { %578 = vrot.lane.b32.xlu1 %v576_v14, %s1250_s9 }
 0xf4d   :  { %v579_v39 = vpop.permute.xlu1 %578 }
 0xf4e   :  { %v581_v37 = vadd.f32 %v579_v39, %v571_v23 }
 0xf50   :  { %1206 = vtanh.f32 %v581_v37 }
 0xf5d   :  { %v1207_v40 = vpop.eup %1206 }
 0xf5e   :  { %584 = vrot.lane.b32.xlu0 %v1207_v40, %s1249_s2  ;;  %v1159_v40 = vld [vmem:[%s1490_s1 + $0x30] sm:$0xff]  }
 0xfd0   :  { %v585_v41 = vpop.permute.xlu0 %584 }
 0xfd1   :  { %v587_v42 = vmul.f32 %v1205_v36, %v585_v41  ;;  %v842_v41 = vsub.s32 1, %v1333_v18 }
 0xfd3   :  { %v588_v43 = vpack.c.bf16 %v587_v42, %v587_v42  ;;  %v843_v42 = vrot.slane %v1339_v20, %v842_v41 }
 0xfd5   :  { %590 = vrot.lane.b32.xlu1 %v588_v43, %s1250_s9 }
0x1047   :  { %v591_v44 = vpop.permute.xlu1 %590 }
0x1048   :  { %1095 = vmatmul.mubr.msk.bf16.vlgmr.msra.gmra.mxu0 %vm159_vm2, %v591_v44 }
0x1049   :  { %1108 = vmatprep.mubr.msk.bf16.mxu0 %vm1247_vm1, %v1246_v6  ;;  %1107 = vmatpush3.bf16.msra.mxu0 %v1149_v32 }
0x104a   :  { %1120 = vmatprep.subr.bf16.mxu0 %v1246_v6 }
0x1050   :  { %1109 = vmatmul.mubr.msk.bf16.vlgmr.msra.gmra.mxu0 %vm69_vm0, %v29_v19 }
0x1051   :  { %1136 = vmatprep.mubr.msk.bf16.mxu0 %vm1247_vm1, %v1246_v6  ;;  %1121 = vmatpush3.bf16.msra.mxu0 %v1152_v24 }
0x1052   :  { %1122 = vmatprep.subr.bf16.mxu0 %v1246_v6 }
0x1055   :  { %1123 = vmatpush3.bf16.msra.mxu0 %v1153_v25 }
0x1056   :  { %1124 = vmatprep.subr.bf16.mxu0 %v1246_v6 }
0x1059   :  { %1125 = vmatpush3.bf16.msra.mxu0 %v1154_v27 }
0x105a   :  { %1126 = vmatprep.subr.bf16.mxu0 %v1246_v6 }
0x105d   :  { %1127 = vmatpush3.bf16.msra.mxu0 %v1155_v31 }
0x105e   :  { %1128 = vmatprep.subr.bf16.mxu0 %v1246_v6 }
0x1061   :  { %1129 = vmatpush3.bf16.msra.mxu0 %v1156_v33 }
0x1062   :  { %1130 = vmatprep.subr.bf16.mxu0 %v1246_v6 }
0x1065   :  { %1131 = vmatpush3.bf16.msra.mxu0 %v1157_v35 }
0x1066   :  { %1132 = vmatprep.subr.bf16.mxu0 %v1246_v6 }
0x1108   :  { %v629_v45 = vpop.f32.mrf.mxu0 }
0x1109   :  { %v635_v46 = vadd.f32 %v629_v45, %v1346_v30 }
0x110a   :  { %v1096_v47 = vpop.f32.mrf.mxu0 }
0x110b   :  { %1208 = vtanh.f32 %v635_v46  ;;  %v973_v51 = vmul.f32 -1.442695, %v635_v46 }
0x110c   :  { %v632_v48 = vpop.f32.mrf.mxu0 }
0x110d   :  { %1210 = vpow2.f32 %v973_v51 }
0x110e   :  { %v1097_v49 = vpop.f32.mrf.mxu0 }
0x1110   :  { %v776_v36 = vpop.f32.mrf.mxu0 }
0x1112   :  { %v1110_v38 = vpop.f32.mrf.mxu0 }
0x1114   :  { %v779_v14 = vpop.f32.mrf.mxu0 }
0x1116   :  { %v1111_v23 = vpop.f32.mrf.mxu0 }
0x1118   :  { %v1209_v50 = vpop.eup %1208 }
0x1119   :  { %645 = vrot.lane.b32.xlu0 %v1209_v50, %s1249_s2 }
0x111a   :  { %v1211_v52 = vpop.eup %1210 }
0x111b   :  { %v639_v53 = vadd.f32 1.0, %v1211_v52 }
0x111d   :  { %1212 = vrcp.f32 %v639_v53 }
0x112a   :  { %v1213_v54 = vpop.eup %1212 }
0x112b   :  { %v643_v57 = vmul.f32 %v1213_v54, %v581_v37  ;;  %v1158_v37 = vld [vmem:[%s1490_s1 + $0x38] sm:$0xff]   ;;  %s946_s1 = sshll.u32 %s1251_s6, 4  ;;  %s947_s1 = int_to_ptr.vmem [resolvable:$true] %s946_s1 }
0x112c   :  { %1133 = vmatpush3.bf16.msra.mxu0 %v1158_v37  ;;  %s1224_s7 = scalar_lea.vmem %s947_s1, 128  ;;  %p1229_p1 = scmp.lt.s32.totalorder %s947_s1, %s947_s1 }
0x112d   :  { %1134 = vmatprep.subr.bf16.mxu0 %v1246_v6  ;;  %p1225_p0 = scmp.ne.s32.totalorder %s947_s1, %s1224_s7  ;;  %p1230_p2 = scmp.lt.s32.totalorder %s1224_s7, %s1224_s7 }
0x112f   :  { %p1231_p3 = por %p1230_p2, %p1229_p1 }
0x1130   :  { %1135 = vmatpush3.bf16.msra.mxu0 %v1159_v40 }
0x1131   :  { %p1232_p4 = pnand %p1231_p3, %p1225_p0 }
0x118b   :  { %v646_v55 = vpop.permute.xlu0 %645 }
0x118c   :  { %v648_v56 = vmul.f32 %v1213_v54, %v646_v55 }
0x118e   :  { %650 = vrot.lane.b32.xlu1 %v648_v56, %s1250_s9 }
0x1200   :  { %v651_v26 = vpop.permute.xlu1 %650 }
0x1201   :  { %v653_v30 = vadd.f32 %v651_v26, %v643_v57 }
0x1203   :  { %1214 = vtanh.f32 %v653_v30 }
0x1210   :  { %v1215_v58 = vpop.eup %1214 }
0x1211   :  { %656 = vrot.lane.b32.xlu0 %v1215_v58, %s1249_s2 }
0x1283   :  { %v657_v59 = vpop.permute.xlu0 %656 }
0x1284   :  { %v659_v60 = vmul.f32 %v1213_v54, %v657_v59 }
0x1286   :  { %v660_v61 = vpack.c.bf16 %v659_v60, %v659_v60 }
0x1288   :  { %662 = vrot.lane.b32.xlu1 %v660_v61, %s1250_s9 }
0x12fa   :  { %v663_v62 = vpop.permute.xlu1 %662 }
0x12fb   :  { %1103 = vmatmul.mubr.msk.bf16.vlgmr.msra.gmra.mxu1 %vm159_vm2, %v663_v62 }
0x12fc   :  { %1116 = vmatprep.mubr.msk.bf16.mxu1 %vm1247_vm1, %v1246_v6  ;;  %1113 = vmatpush3.bf16.msra.mxu1 %v1150_v16 }
0x12fd   :  { %1114 = vmatprep.subr.bf16.mxu1 %v1246_v6  ;;  %v849_v6 = vsub.s32 2, %v1333_v18 }
0x12ff   :  { %v850_v51 = vrot.slane %v1339_v20, %v849_v6 }
0x1300   :  { %1115 = vmatpush3.bf16.msra.mxu1 %v1151_v21 }
0x13bb   :  { %v701_v63 = vpop.f32.mrf.mxu1 }
0x13bc   :  { %v707_v0 = vadd.f32 %v701_v63, %v1350_v34 }
0x13bd   :  { %v1104_v1 = vpop.f32.mrf.mxu1 }
0x13be   :  { %1216 = vtanh.f32 %v707_v0  ;;  %v975_v5 = vmul.f32 -1.442695, %v707_v0 }
0x13bf   :  { %v704_v2 = vpop.f32.mrf.mxu1 }
0x13c0   :  { %1218 = vpow2.f32 %v975_v5 }
0x13c1   :  { %v1105_v3 = vpop.f32.mrf.mxu1 }
0x13cb   :  { %v1217_v4 = vpop.eup %1216 }
0x13cc   :  { %717 = vrot.lane.b32.xlu0 %v1217_v4, %s1249_s2 }
0x13cd   :  { %v1219_v7 = vpop.eup %1218 }
0x13ce   :  { %v711_v9 = vadd.f32 1.0, %v1219_v7 }
0x13d0   :  { %1220 = vrcp.f32 %v711_v9 }
0x13dd   :  { %v1221_v10 = vpop.eup %1220 }
0x13de   :  { %v715_v13 = vmul.f32 %v1221_v10, %v653_v30 }
0x143e   :  { %v718_v11 = vpop.permute.xlu0 %717 }
0x143f   :  { %v720_v12 = vmul.f32 %v1221_v10, %v718_v11 }
0x1441   :  { %722 = vrot.lane.b32.xlu1 %v720_v12, %s1250_s9 }
0x14b3   :  { %v723_v15 = vpop.permute.xlu1 %722 }
0x14b4   :  { %v725_v34 = vadd.f32 %v723_v15, %v715_v13 }
0x14b6   :  { %1222 = vtanh.f32 %v725_v34 }
0x14c3   :  { %v1223_v22 = vpop.eup %1222 }
0x14c4   :  { %728 = vrot.lane.b32.xlu0 %v1223_v22, %s1249_s2 }
0x1536   :  { %v729_v28 = vpop.permute.xlu0 %728 }
0x1537   :  { %v731_v29 = vmul.f32 %v1221_v10, %v729_v28 }
0x1539   :  { %v732_v8 = vpack.c.bf16 %v731_v29, %v731_v29 }
0x153b   :  { %783 = vrot.lane.b32.xlu1 %v732_v8, %s1250_s9 }
0x15ad   :  { %v784_v39 = vpop.permute.xlu1 %783 }
0x15ae   :  { %1117 = vmatmul.mubr.msk.bf16.vlgmr.msra.gmra.mxu1 %vm159_vm2, %v784_v39 }
0x166e   :  { %v834_v43 = vpop.f32.mrf.mxu1 }
0x166f   :  { %v835_v44 = vadd.f32 %v834_v43, %v776_v36 }
0x1670   :  { %v1118_v45 = vpop.f32.mrf.mxu1 }
0x1671   :  { %v844_v46 = vadd.f32 %v843_v42, %v835_v44 }
0x1672   :  { %v837_v47 = vpop.f32.mrf.mxu1 }
0x1673   :  { %v845_v48 = vmax.f32 %v844_v46, 0.0 }
0x1674   :  { %v1119_v49 = vpop.f32.mrf.mxu1 }
0x1675   :  { %v846_v50 = vpack.c.bf16 %v845_v48, %v845_v48 }
0x1677   :  { %1137 = vmatmul.mubr.bf16.vlgmr.msra.gmra.mxu0 %v846_v50 }
0x1737   :  { %v933_v52 = vpop.f32.mrf.mxu0 }
0x1738   :  { %v934_v53 = vadd.f32 %v933_v52, %v850_v51 }
0x1739   :  { %v1138_v54 = vpop.f32.mrf.mxu0 }
0x173a   :  { %939 = vst [vmem:[#allocation2] sm:$0xff] %v934_v53 }
0x173b   :  { %v936_v55 = vpop.f32.mrf.mxu0 }
0x173c   :  { %1235 = shalt.err (!%p1232_p4)
}
0x173d   :  { %949 = dma.vmem_to_hbm [thread:$0]  %s947_s1, 128, %s1492_s3, [#allocation3]   ;;  %v1139_v18 = vpop.f32.mrf.mxu0 }
0x173e   :  { %1244 = dma.done.wait [#allocation3], 128  }
0x173f   :  { %1245 = vsyncadd [#allocation3], 4294967168 }
0x1740   :  { %953 = vsyncpa [#allocation3], 1 }

</bundles_post_ra>
